<compile_context>
chip_gen: v5e
topology: v5e:2x2
jax: 0.10.0
libtpu: 0.0.40
codegen_flags: <defaults>
</compile_context>

<pallas_src>
import jax
import jax.numpy as jnp
from jax.experimental import pallas as pl
from jax.experimental.pallas import tpu as pltpu


# --------------------------------------------------------------------------- #
# Kernels
# --------------------------------------------------------------------------- #
def _mlp_kernel_resident(x_ref, w1_ref, b1_ref, w2_ref, b2_ref, o_ref):
    """Full hidden dimension resident in VMEM; one (tile_m, C) token tile."""
    x = x_ref[...]
    h = jnp.dot(x, w1_ref[...], preferred_element_type=jnp.float32)
    h = h + b1_ref[...].astype(jnp.float32)
    g = jax.nn.gelu(h, approximate=True)            # torch GELU(approximate='tanh')
    y = jnp.dot(g.astype(x.dtype), w2_ref[...], preferred_element_type=jnp.float32)
    o_ref[...] = (y + b2_ref[...].astype(jnp.float32)).astype(o_ref.dtype)


def _mlp_kernel_streamed_f32out(x_ref, w1_ref, b1_ref, w2_ref, b2_ref, o_ref):
    """Streamed hidden slabs; f32 output block doubles as the accumulator."""
    k = pl.program_id(1)

    @pl.when(k == 0)
    def _init():
        o_ref[...] = jnp.zeros_like(o_ref)

    x = x_ref[...]
    h = jnp.dot(x, w1_ref[...], preferred_element_type=jnp.float32)
    h = h + b1_ref[...].astype(jnp.float32)
    g = jax.nn.gelu(h, approximate=True)
    o_ref[...] += jnp.dot(g.astype(x.dtype), w2_ref[...],
                          preferred_element_type=jnp.float32)

    @pl.when(k == pl.num_programs(1) - 1)
    def _finalize():
        o_ref[...] += b2_ref[...].astype(jnp.float32)


def _mlp_kernel_streamed_acc(x_ref, w1_ref, b1_ref, w2_ref, b2_ref, o_ref, acc_ref):
    """Streamed hidden slabs; f32 scratch accumulator for non-f32 outputs."""
    k = pl.program_id(1)

    @pl.when(k == 0)
    def _init():
        acc_ref[...] = jnp.zeros_like(acc_ref)

    x = x_ref[...]
    h = jnp.dot(x, w1_ref[...], preferred_element_type=jnp.float32)
    h = h + b1_ref[...].astype(jnp.float32)
    g = jax.nn.gelu(h, approximate=True)
    acc_ref[...] += jnp.dot(g.astype(x.dtype), w2_ref[...],
                            preferred_element_type=jnp.float32)

    @pl.when(k == pl.num_programs(1) - 1)
    def _finalize():
        o_ref[...] = (acc_ref[...] + b2_ref[...].astype(jnp.float32)).astype(o_ref.dtype)


# --------------------------------------------------------------------------- #
# Tiling / budgeting helpers
# --------------------------------------------------------------------------- #
def _round_up(x, m):
    return ((x + m - 1) // m) * m


def _vmem_budget_bytes():
    """Physical VMEM capacity minus headroom for Mosaic internal scratch."""
    try:
        cap = int(pltpu.get_tpu_info().vmem_capacity_bytes)
    except Exception:
        cap = 64 << 20  # conservative (v7x-sized) fallback
    return max(cap - (8 << 20), 16 << 20)


def _pick_tile_h(H, cap):
    """Largest slab width <= cap dividing H, preferring multiples of 256
    (v6e/v7x MXU is 256x256). Returns None if no aligned divisor exists."""
    for step in (256, 128):
        t = (min(cap, H) // step) * step
        while t >= step:
            if H % t == 0:
                return t
            t -= step
    return None


# --------------------------------------------------------------------------- #
# Wrapper
# --------------------------------------------------------------------------- #
def mlp_forward(x, w1, b1, w2, b2, *, tile_m=None, tile_h=None):
    """x: (B, T, C); w1: (C, H); b1: (H,); w2: (H, C); b2: (C,)."""
    B, T, C = x.shape
    H = w1.shape[1]
    M = B * T

    out_dtype = x.dtype
    x_is = jnp.dtype(x.dtype).itemsize
    w_is = jnp.dtype(w1.dtype).itemsize
    o_is = jnp.dtype(out_dtype).itemsize
    out_is_f32 = jnp.dtype(out_dtype) == jnp.dtype(jnp.float32)

    x2d = x.reshape(M, C)
    b1_2d = b1.reshape(1, H)
    b2_2d = b2.reshape(1, C)

    budget = _vmem_budget_bytes()

    # ---- tile_m: large enough to be MXU-bound; >=2 tiles for v7x megacore ----
    if tile_m is None:
        tile_m = min(1024, _round_up(M, 8))
        if M >= 1024 and pl.cdiv(M, tile_m) < 2:
            tile_m = _round_up(pl.cdiv(M, 2), 8)
    tile_m = max(8, min(_round_up(tile_m, 8), _round_up(M, 8)))

    # ---- weights-resident fast path ----
    def resident_vmem(tm):
        return (
            2 * 2 * C * H * w_is          # W1 + W2 (double-buffered BlockSpec bufs)
            + 2 * (H + C) * w_is          # biases
            + 2 * tm * C * x_is           # x tiles
            + 2 * tm * C * o_is           # out tiles
            + tm * H * 4                  # f32 hidden / GELU intermediate
            + tm * H * x_is               # cast copy fed to c_proj
        )

    tm_res = tile_m
    while tm_res >= 256 and resident_vmem(tm_res) > budget:
        tm_res //= 2
    use_resident = (tile_h is None) and (resident_vmem(tm_res) <= budget)

    if use_resident:
        tile_m = min(tile_m, tm_res)
        n_m = pl.cdiv(M, tile_m)
        cost = pl.CostEstimate(
            flops=4 * M * C * H,
            transcendentals=M * H,
            bytes_accessed=(M * C * x_is + M * C * o_is
                            + (2 * C * H + H + C) * w_is),
        )
        out2d = pl.pallas_call(
            _mlp_kernel_resident,
            out_shape=jax.ShapeDtypeStruct((M, C), out_dtype),
            grid_spec=pltpu.PrefetchScalarGridSpec(
                num_scalar_prefetch=0,
                grid=(n_m,),
                in_specs=[
                    pl.BlockSpec((tile_m, C), lambda i: (i, 0)),  # x tile (streamed)
                    pl.BlockSpec((C, H), lambda i: (0, 0)),       # W1 (resident)
                    pl.BlockSpec((1, H), lambda i: (0, 0)),       # b1 (resident)
                    pl.BlockSpec((H, C), lambda i: (0, 0)),       # W2 (resident)
                    pl.BlockSpec((1, C), lambda i: (0, 0)),       # b2 (resident)
                ],
                out_specs=pl.BlockSpec((tile_m, C), lambda i: (i, 0)),
            ),
            compiler_params=pltpu.CompilerParams(
                dimension_semantics=("parallel",),
                vmem_limit_bytes=int(budget)),
            cost_estimate=cost,
        )(x2d, w1, b1_2d, w2, b2_2d)
        return out2d.reshape(B, T, C)

    # ---- streamed hidden-slab path (weights too large for VMEM) ----
    def streamed_vmem(tm, th):
        return (
            2 * tm * C * x_is             # x tiles
            + 2 * 2 * C * th * w_is       # W1 + W2 slabs (double-buffered)
            + 2 * th * w_is               # b1 slabs
            + 2 * C * w_is                # b2
            + 2 * tm * C * o_is           # out tiles
            + (0 if out_is_f32 else tm * C * 4)   # acc scratch
            + tm * th * 4                 # f32 hidden / GELU intermediate
            + tm * th * x_is              # cast copy fed to c_proj
        )

    Hp = H
    w1p, b1p, w2p = w1, b1_2d, w2
    if tile_h is None:
        cap = 2048
        while cap > 256 and streamed_vmem(tile_m, cap) > budget:
            cap -= 256
        while tile_m > 256 and streamed_vmem(tile_m, cap) > budget:
            tile_m //= 2
        tile_h = _pick_tile_h(H, cap)
        if tile_h is None:
            # No aligned divisor: zero-pad H. Padded hidden units contribute
            # exactly zero to c_proj (padded W2 rows are zero), so it's safe.
            Hp = _round_up(H, 256)
            w1p = jnp.pad(w1, ((0, 0), (0, Hp - H)))
            b1p = jnp.pad(b1_2d, ((0, 0), (0, Hp - H)))
            w2p = jnp.pad(w2, ((0, Hp - H), (0, 0)))
            tile_h = _pick_tile_h(Hp, cap)
    assert tile_h is not None and Hp % tile_h == 0, \
        "hidden tile must divide (padded) H exactly (contraction dim)"

    n_m = pl.cdiv(M, tile_m)
    n_h = Hp // tile_h

    cost = pl.CostEstimate(
        flops=4 * M * C * Hp,
        transcendentals=M * Hp,
        # Weights are re-streamed once per M tile in this path.
        bytes_accessed=(M * C * x_is + M * C * o_is
                        + n_m * (2 * C * Hp + Hp) * w_is + C * w_is),
    )

    if out_is_f32:
        kernel = _mlp_kernel_streamed_f32out
        scratch = []
    else:
        kernel = _mlp_kernel_streamed_acc
        scratch = [pltpu.VMEM((tile_m, C), jnp.float32)]

    out2d = pl.pallas_call(
        kernel,
        out_shape=jax.ShapeDtypeStruct((M, C), out_dtype),
        grid_spec=pltpu.PrefetchScalarGridSpec(
            num_scalar_prefetch=0,
            grid=(n_m, n_h),
            in_specs=[
                pl.BlockSpec((tile_m, C), lambda i, k: (i, 0)),   # x tile
                pl.BlockSpec((C, tile_h), lambda i, k: (0, k)),   # W1 slab
                pl.BlockSpec((1, tile_h), lambda i, k: (0, k)),   # b1 slab
                pl.BlockSpec((tile_h, C), lambda i, k: (k, 0)),   # W2 slab
                pl.BlockSpec((1, C), lambda i, k: (0, 0)),        # b2 (tiny)
            ],
            out_specs=pl.BlockSpec((tile_m, C), lambda i, k: (i, 0)),
            scratch_shapes=scratch,
        ),
        compiler_params=pltpu.CompilerParams(
            dimension_semantics=("parallel", "arbitrary"),
            vmem_limit_bytes=int(budget)),
        cost_estimate=cost,
    )(x2d, w1p, b1p, w2p, b2_2d)

    return out2d.reshape(B, T, C)


# --------------------------------------------------------------------------- #
# Reference + demo
# --------------------------------------------------------------------------- #
def gelu_tanh_ref(v):
    c = 0.7978845608028654  # sqrt(2/pi)
    return 0.5 * v * (1.0 + jnp.tanh(c * (v + 0.044715 * v ** 3)))


if __name__ == "__main__":
    # Config consistent with the module: n_embd=32 -> hidden 4*n_embd=128.
    B, T, C = 2, 8, 32
    H = 4 * C

    key = jax.random.PRNGKey(0)
    kx, k1, kb1, k2, kb2 = jax.random.split(key, 5)

    x = jax.random.normal(kx, (B, T, C), dtype=jnp.float32)

    # PyTorch Linear stores (out, in); we keep the transposed (in, out) layout.
    w1 = jax.random.normal(k1, (C, H), dtype=jnp.float32) * (1.0 / jnp.sqrt(C))
    b1 = jax.random.normal(kb1, (H,), dtype=jnp.float32) * 0.01
    w2 = jax.random.normal(k2, (H, C), dtype=jnp.float32) * (1.0 / jnp.sqrt(H))
    b2 = jax.random.normal(kb2, (C,), dtype=jnp.float32) * 0.01

    out = mlp_forward(x, w1, b1, w2, b2)
    out = jax.block_until_ready(out)

    # Pure-JAX reference.
    ref = (gelu_tanh_ref(x.reshape(-1, C) @ w1 + b1) @ w2 + b2).reshape(B, T, C)
    assert out.shape == (B, T, C)
    assert jnp.allclose(out, ref, atol=1e-4, rtol=1e-4), "mismatch vs reference"

    # Also exercise the streamed (non-resident) path for coverage.
    out_s = mlp_forward(x, w1, b1, w2, b2, tile_m=8, tile_h=128)
    out_s = jax.block_until_ready(out_s)
    assert jnp.allclose(out_s, ref, atol=1e-4, rtol=1e-4), "streamed-path mismatch"

    print("KERNEL_OK")
</pallas_src>

<mosaic_0001>
module attributes {stable_mosaic.version = 11 : i64} {
  func.func @_mlp_kernel_resident(%arg0: i32, %arg1: memref<16x32xf32, #tpu.memory_space<vmem>>, %arg2: memref<32x128xf32, #tpu.memory_space<vmem>>, %arg3: memref<1x128xf32, #tpu.memory_space<vmem>>, %arg4: memref<128x32xf32, #tpu.memory_space<vmem>>, %arg5: memref<1x32xf32, #tpu.memory_space<vmem>>, %arg6: memref<16x32xf32, #tpu.memory_space<vmem>>) attributes {dimension_semantics = [#tpu.dimension_semantics<parallel>], iteration_bounds = array<i64: 1>, scalar_prefetch = 0 : i64, scratch_operands = 0 : i64, tpu.core_type = #tpu.core_type<tc>, window_params = [{transform_indices = @transform_0, window_bounds = array<i64: 16, 32>}, {pipeline_mode = #tpu.pipeline_mode<synchronous>, transform_indices = @transform_1, window_bounds = array<i64: 32, 128>}, {pipeline_mode = #tpu.pipeline_mode<synchronous>, transform_indices = @transform_2, window_bounds = array<i64: 1, 128>}, {pipeline_mode = #tpu.pipeline_mode<synchronous>, transform_indices = @transform_3, window_bounds = array<i64: 128, 32>}, {pipeline_mode = #tpu.pipeline_mode<synchronous>, transform_indices = @transform_4, window_bounds = array<i64: 1, 32>}, {transform_indices = @transform_5, window_bounds = array<i64: 16, 32>}]} {
    %c0 = arith.constant 0 : index
    %c0_0 = arith.constant 0 : index
    %0 = vector.load %arg1[%c0, %c0_0] : memref<16x32xf32, #tpu.memory_space<vmem>>, vector<16x32xf32>
    %c0_1 = arith.constant 0 : index
    %c0_2 = arith.constant 0 : index
    %1 = vector.load %arg2[%c0_1, %c0_2] : memref<32x128xf32, #tpu.memory_space<vmem>>, vector<32x128xf32>
    %cst = arith.constant dense<0.000000e+00> : vector<16x128xf32>
    %2 = tpu.matmul %0, %1, %cst {dimension_numbers = #tpu.dot_dimension_numbers<[1], [0], [0], [1], [0, 0, 1, 1], [], []>} : vector<16x32xf32>, vector<32x128xf32>, vector<16x128xf32> -> vector<16x128xf32>
    %c0_3 = arith.constant 0 : index
    %c0_4 = arith.constant 0 : index
    %3 = vector.load %arg3[%c0_3, %c0_4] : memref<1x128xf32, #tpu.memory_space<vmem>>, vector<1x128xf32>
    %4 = vector.broadcast %3 : vector<1x128xf32> to vector<16x128xf32>
    %5 = arith.addf %2, %4 : vector<16x128xf32>
    %6 = arith.mulf %5, %5 : vector<16x128xf32>
    %7 = arith.mulf %5, %6 : vector<16x128xf32>
    %cst_5 = arith.constant 4.471500e-02 : f32
    %8 = vector.broadcast %cst_5 : f32 to vector<16x128xf32>
    %9 = arith.mulf %8, %7 : vector<16x128xf32>
    %10 = arith.addf %5, %9 : vector<16x128xf32>
    %cst_6 = arith.constant 0.797884583 : f32
    %11 = vector.broadcast %cst_6 : f32 to vector<16x128xf32>
    %12 = arith.mulf %11, %10 : vector<16x128xf32>
    %13 = math.tanh %12 : vector<16x128xf32>
    %cst_7 = arith.constant 1.000000e+00 : f32
    %14 = vector.broadcast %cst_7 : f32 to vector<16x128xf32>
    %15 = arith.addf %14, %13 : vector<16x128xf32>
    %cst_8 = arith.constant 5.000000e-01 : f32
    %16 = vector.broadcast %cst_8 : f32 to vector<16x128xf32>
    %17 = arith.mulf %16, %15 : vector<16x128xf32>
    %18 = arith.mulf %5, %17 : vector<16x128xf32>
    %c0_9 = arith.constant 0 : index
    %c0_10 = arith.constant 0 : index
    %19 = vector.load %arg4[%c0_9, %c0_10] : memref<128x32xf32, #tpu.memory_space<vmem>>, vector<128x32xf32>
    %cst_11 = arith.constant dense<0.000000e+00> : vector<16x32xf32>
    %20 = tpu.matmul %18, %19, %cst_11 {dimension_numbers = #tpu.dot_dimension_numbers<[1], [0], [0], [1], [0, 0, 1, 1], [], []>} : vector<16x128xf32>, vector<128x32xf32>, vector<16x32xf32> -> vector<16x32xf32>
    %c0_12 = arith.constant 0 : index
    %c0_13 = arith.constant 0 : index
    %21 = vector.load %arg5[%c0_12, %c0_13] : memref<1x32xf32, #tpu.memory_space<vmem>>, vector<1x32xf32>
    %22 = vector.broadcast %21 : vector<1x32xf32> to vector<16x32xf32>
    %23 = arith.addf %20, %22 : vector<16x32xf32>
    %c0_14 = arith.constant 0 : index
    %c0_15 = arith.constant 0 : index
    %24 = vector.load %arg6[%c0_14, %c0_15] : memref<16x32xf32, #tpu.memory_space<vmem>>, vector<16x32xf32>
    tpu.vector_store %arg6[%c0_14, %c0_15], %23 {strides = array<i32>} : memref<16x32xf32, #tpu.memory_space<vmem>>, vector<16x32xf32>,
    return
  }
  func.func @transform_0(%arg0: i32) -> (i32, i32) {
    %c0_i32 = arith.constant 0 : i32
    %c0_i32_0 = arith.constant 0 : i32
    return %arg0, %c0_i32 : i32, i32
  }
  func.func @transform_1(%arg0: i32) -> (i32, i32) {
    %c0_i32 = arith.constant 0 : i32
    %c0_i32_0 = arith.constant 0 : i32
    %c0_i32_1 = arith.constant 0 : i32
    return %c0_i32, %c0_i32_0 : i32, i32
  }
  func.func @transform_2(%arg0: i32) -> (i32, i32) {
    %c0_i32 = arith.constant 0 : i32
    %c0_i32_0 = arith.constant 0 : i32
    %c0_i32_1 = arith.constant 0 : i32
    return %c0_i32, %c0_i32_0 : i32, i32
  }
  func.func @transform_3(%arg0: i32) -> (i32, i32) {
    %c0_i32 = arith.constant 0 : i32
    %c0_i32_0 = arith.constant 0 : i32
    %c0_i32_1 = arith.constant 0 : i32
    return %c0_i32, %c0_i32_0 : i32, i32
  }
  func.func @transform_4(%arg0: i32) -> (i32, i32) {
    %c0_i32 = arith.constant 0 : i32
    %c0_i32_0 = arith.constant 0 : i32
    %c0_i32_1 = arith.constant 0 : i32
    return %c0_i32, %c0_i32_0 : i32, i32
  }
  func.func @transform_5(%arg0: i32) -> (i32, i32) {
    %c0_i32 = arith.constant 0 : i32
    %c0_i32_0 = arith.constant 0 : i32
    return %arg0, %c0_i32 : i32, i32
  }
}

</mosaic_0001>

<bundles_post_ra>
// kernel: tpu_custom_call.1
= control target key start
LH: loop header
LB: loop body
LE: loop exit
PB: predicated region body
PF: predicated region fallthrough
CT: control target
= control target key end

     0   :  { %s307_s0 = inlined_call_operand.vmem [shape: f32[16,32], index: 0, kind: input, shape index: {}]   ;;  %s308_s1 = inlined_call_operand.vmem [shape: f32[32,128], index: 1, kind: input, shape index: {}]   ;;  %s309_s2 = inlined_call_operand.vmem [shape: f32[1,128], index: 2, kind: input, shape index: {}]   ;;  %s310_s3 = inlined_call_operand.vmem [shape: f32[128,32], index: 3, kind: input, shape index: {}]   ;;  %s311_s4 = inlined_call_operand.vmem [shape: f32[1,32], index: 4, kind: input, shape index: {}]   ;;  %s312_s5 = inlined_call_operand.hbm [shape: f32[16,32], index: 5, kind: output, shape index: {}]  }
   0x1   :  { %v26_v0 = vld [vmem:[%s308_s1 + $0x18] sm:$0xff]  ;;  %v25_v1 = vld [vmem:[%s308_s1 + $0x10] sm:$0xff]  ;;  %v24_v2 = vld [vmem:[%s308_s1 + $0x8] sm:$0xff] }
   0x2   :  { %50 = vmatpush.msra.mxu0 %v26_v0  ;;  %v94_v3 = vld [vmem:[%s310_s3 + $0x78] sm:$0xff]  ;;  %v93_v4 = vld [vmem:[%s310_s3 + $0x70] sm:$0xff]  ;;  %v23_v5 = vld [vmem:[%s308_s1] sm:$0xff] }
   0x3   :  { %99 = vmatpush.msra.mxu1 %v94_v3  ;;  %v92_v6 = vld [vmem:[%s310_s3 + $0x68] sm:$0xff]  ;;  %144 = vmatpush.msra.mxu2 %v94_v3 }
   0x4   :  { %51 = vmatpush.msra.mxu0 %v25_v1 }
   0x5   :  { %10 = vsyncpa [#allocation3], 0  ;;  %v21_v7 = vld [vmem:[%s307_s0] sm:$0xff]  ;;  %vm31_vm0 = vcmask 261120   ;;  %100 = vmatpush.msra.mxu1 %v93_v4  ;;  %145 = vmatpush.msra.mxu2 %v93_v4  ;;  %v22_v8 = vld [vmem:[%s307_s0 + $0x8] sm:$0xff]  ;;  %s195_s11 = smov [#allocation2]  }
   0x6   :  { %52 = vmatpush.msra.mxu0 %v24_v2  ;;  %v91_v9 = vld [vmem:[%s310_s3 + $0x60] sm:$0xff]  ;;  %v90_v10 = vld [vmem:[%s310_s3 + $0x58] sm:$0xff]  ;;  %v89_v11 = vld [vmem:[%s310_s3 + $0x50] sm:$0xff]  ;;  %s128_s12 = sshll.u32 %s195_s11, 4  ;;  %s130_s15 = sshll.u32 %s312_s5, 4  ;;  %s129_s12 = int_to_ptr.vmem [resolvable:$true] %s128_s12  ;;  %s131_s15 = int_to_ptr.hbm [resolvable:$true] %s130_s15 }
   0x7   :  { %101 = vmatpush.msra.mxu1 %v92_v6  ;;  %146 = vmatpush.msra.mxu2 %v92_v6  ;;  %v88_v12 = vld [vmem:[%s310_s3 + $0x48] sm:$0xff]  ;;  %v87_v13 = vld [vmem:[%s310_s3 + $0x40] sm:$0xff]  ;;  %v86_v14 = vld [vmem:[%s310_s3 + $0x38] sm:$0xff]  ;;  %s196_s0 = smov 128   ;;  %s197_s16 = smov 8  }
   0x8   :  { %53 = vmatpush.msra.mxu0 %v23_v5  ;;  %v85_v15 = vld [vmem:[%s310_s3 + $0x30] sm:$0xff]  ;;  %v84_v16 = vld [vmem:[%s310_s3 + $0x28] sm:$0xff]  ;;  %v83_v17 = vld [vmem:[%s310_s3 + $0x20] sm:$0xff] }
   0x9   :  { %142 = vmatmul.msk.f32.vlgmr.msra.gmra.mxu0 %vm31_vm0, %v21_v7  ;;  %102 = vmatpush.msra.mxu1 %v91_v9  ;;  %v82_v18 = vld [vmem:[%s310_s3 + $0x18] sm:$0xff]  ;;  %v81_v19 = vld [vmem:[%s310_s3 + $0x10] sm:$0xff]  ;;  %v80_v20 = vld [vmem:[%s310_s3 + $0x8] sm:$0xff] }
   0xa   :  { %147 = vmatpush.msra.mxu2 %v91_v9  ;;  %v79_v21 = vld [vmem:[%s310_s3] sm:$0xff] }
   0xb   :  { %103 = vmatpush.msra.mxu1 %v90_v10  ;;  %v163_v22 = vld [vmem:[%s309_s2] ss:$0 sm:$0xff] }
   0xc   :  { %148 = vmatpush.msra.mxu2 %v90_v10  ;;  %v164_v45 = vld [vmem:[%s311_s4] ss:$0 sm:$0xff] }
   0xd   :  { %104 = vmatpush.msra.mxu1 %v89_v11 }
   0xe   :  { %149 = vmatpush.msra.mxu2 %v89_v11 }
   0xf   :  { %105 = vmatpush.msra.mxu1 %v88_v12 }
  0x10   :  { %150 = vmatpush.msra.mxu2 %v88_v12 }
  0x11   :  { %143 = vmatmul.msk.f32.gmra.mxu0 %vm31_vm0, %v22_v8  ;;  %106 = vmatpush.msra.mxu1 %v87_v13 }
  0x12   :  { %151 = vmatpush.msra.mxu2 %v87_v13 }
  0x13   :  { %107 = vmatpush.msra.mxu1 %v86_v14 }
  0x14   :  { %152 = vmatpush.msra.mxu2 %v86_v14 }
  0x15   :  { %108 = vmatpush.msra.mxu1 %v85_v15 }
  0x16   :  { %153 = vmatpush.msra.mxu2 %v85_v15 }
  0x17   :  { %109 = vmatpush.msra.mxu1 %v84_v16 }
  0x18   :  { %154 = vmatpush.msra.mxu2 %v84_v16 }
  0x19   :  { %110 = vmatpush.msra.mxu1 %v83_v17 }
  0x1a   :  { %155 = vmatpush.msra.mxu2 %v83_v17 }
  0x1b   :  { %111 = vmatpush.msra.mxu1 %v82_v18 }
  0x1c   :  { %156 = vmatpush.msra.mxu2 %v82_v18 }
  0x1d   :  { %112 = vmatpush.msra.mxu1 %v81_v19 }
  0x1e   :  { %157 = vmatpush.msra.mxu2 %v81_v19 }
  0x1f   :  { %113 = vmatpush.msra.mxu1 %v80_v20 }
  0x20   :  { %158 = vmatpush.msra.mxu2 %v80_v20 }
  0x21   :  { %114 = vmatpush.msra.mxu1 %v79_v21 }
  0x22   :  { %159 = vmatpush.msra.mxu2 %v79_v21 }
  0x86   :  { %v55_v23 = vpop.f32.mrf.mxu0 }
  0x87   :  { %v56_v24 = vadd.f32 %v163_v22, %v55_v23 }
  0x89   :  { %v61_v25 = vmul.f32 %v56_v24, %v56_v24 }
  0x8b   :  { %v63_v26 = vmul.f32 %v61_v25, %v56_v24 }
  0x8d   :  { %v65_v27 = vmul.f32 0.044715, %v63_v26 }
  0x8e   :  { %v58_v28 = vpop.f32.mrf.mxu0 }
  0x8f   :  { %v59_v29 = vadd.f32 %v163_v22, %v58_v28  ;;  %v67_v30 = vadd.f32 %v65_v27, %v56_v24 }
  0x91   :  { %v62_v31 = vmul.f32 %v59_v29, %v59_v29  ;;  %v69_v32 = vmul.f32 0.7978846, %v67_v30 }
  0x93   :  { %v64_v33 = vmul.f32 %v62_v31, %v59_v29  ;;  %165 = vtanh.f32 %v69_v32 }
  0x95   :  { %v66_v34 = vmul.f32 0.044715, %v64_v33 }
  0x97   :  { %v68_v35 = vadd.f32 %v66_v34, %v59_v29 }
  0x99   :  { %v166_v36 = vpop.eup %165  ;;  %v70_v37 = vmul.f32 0.7978846, %v68_v35 }
  0x9a   :  { %v73_v38 = vadd.f32 1.0, %v166_v36 }
  0x9b   :  { %167 = vtanh.f32 %v70_v37 }
  0x9c   :  { %v75_v39 = vmul.f32 0.5, %v73_v38 }
  0x9e   :  { %v77_v40 = vmul.f32 %v75_v39, %v56_v24 }
  0xa0   :  { %115 = vmatmul.f32.vlgmr.msra.gmra.mxu1 %v77_v40 }
  0xa1   :  { %v168_v41 = vpop.eup %167 }
  0xa2   :  { %v74_v42 = vadd.f32 1.0, %v168_v41 }
  0xa4   :  { %v76_v43 = vmul.f32 0.5, %v74_v42 }
  0xa6   :  { %v78_v44 = vmul.f32 %v76_v43, %v59_v29 }
  0xa8   :  { %118 = vmatmul.f32.vlgmr.msra.gmra.mxu2 %v78_v44 }
 0x11d   :  { %v116_v46 = vpop.f32.mrf.mxu1 }
 0x11e   :  { %v117_v47 = vadd.f32 %v164_v45, %v116_v46 }
 0x120   :  { %122 = vst.msk [vmem:[#allocation2] sm:$0xff] %vm31_vm0, %v117_v47 }
 0x12b   :  { %v119_v48 = vpop.f32.mrf.mxu2 }
 0x12c   :  { %v120_v49 = vadd.f32 %v164_v45, %v119_v48 }
 0x12e   :  { %123 = vst.msk [vmem:[#allocation2 + $0x8] sm:$0xff] %vm31_vm0, %v120_v49 }
 0x12f   :  { %136 = dma.vmem_to_hbm [thread:$0]  %s129_s12, 256, %s131_s15, [#allocation3], %s196_s0, %s196_s0, %s197_s16  }
 0x130   :  { %193 = dma.done.wait [#allocation3], 256  }
 0x131   :  { %194 = vsyncadd [#allocation3], 4294967040 }
 0x132   :  { %141 = vsyncpa [#allocation3], 1 }

</bundles_post_ra>
